<compile_context>
chip_gen: v5e
topology: v5e:2x2
jax: 0.10.0
libtpu: 0.0.40
codegen_flags: <defaults>
</compile_context>

<pallas_src>
import jax
import jax.numpy as jnp
from jax.experimental import pallas as pl
from jax.experimental.pallas import tpu as pltpu

F1 = 2                       # torch Head.f1  (query/key positions, tril is 2x2)
F2 = 10                      # torch Head.f2  (inner heads per Head module)
N_MODULES = 4                # MultiHeadAttention holds 4 Head modules
NH = N_MODULES * F2          # 40 fused heads
FEAT = 2 * F1                # 4 = in/out features of every nn.Linear
KQV_W = NH * FEAT            # 160 packed lanes per projection block
WSTRIDE = ((KQV_W + 127) // 128) * 128   # 256: lane stride so slices are vreg-aligned
_HI = jax.lax.Precision.HIGHEST


def _mha_kernel(zf_ref, w_ref, o_ref):
    f32, bf16 = jnp.float32, jnp.bfloat16
    N = zf_ref.shape[0]              # B*B rows, ordered [pos0 (b, j) | pos1 (b, j)]
    B = o_ref.shape[0] // 2
    half = B // 2
    nh2 = N // 2

    # --- one fused projection for all 40 heads x {K, Q, V}: (N, 4) @ (4, 672).
    proj = jnp.dot(zf_ref[...], w_ref[...], preferred_element_type=f32)
    kf = proj[:, 0:KQV_W]                              # (N, 160)  keys   [k0 | k1]
    q1 = proj[nh2:, WSTRIDE:WSTRIDE + KQV_W]           # (N/2,160) queries @ position 1
    vf = proj[:, 2 * WSTRIDE:2 * WSTRIDE + KQV_W]      # (N, 160)  values [v0 | v1]

    # --- stack (q1*k0, q1*k1, v0, v1) along sublanes; two matmuls (lane-sum per
    #     head, then sublane-sum per (position, batch) group) give s10/s11/vs0/vs1.
    qk = kf * jnp.concatenate([q1, q1], axis=0)              # (N, 160)
    big = jnp.concatenate([qk, vf], axis=0).astype(bf16)     # (2N, 160)

    l_io = jax.lax.broadcasted_iota(jnp.int32, (FEAT * NH, NH), 0)
    h_io = jax.lax.broadcasted_iota(jnp.int32, (FEAT * NH, NH), 1)
    glo = h_io * FEAT
    gsel = jnp.where((l_io >= glo) & (l_io < glo + FEAT), 1.0, 0.0).astype(bf16)  # (160, 40)

    r_io = jax.lax.broadcasted_iota(jnp.int32, (4 * B, 2 * N), 0)
    c_io = jax.lax.broadcasted_iota(jnp.int32, (4 * B, 2 * N), 1)
    rlo = r_io * half
    rsum4 = jnp.where((c_io >= rlo) & (c_io < rlo + half), 1.0, 0.0).astype(bf16)  # (4B, 2N)

    sg = jnp.dot(big, gsel, preferred_element_type=f32)                  # (2N, 40)
    red = jnp.dot(rsum4, sg.astype(bf16), preferred_element_type=f32)    # (4B, 40)
    s10, s11 = red[0:B], red[B:2 * B]
    vs0, vs1 = red[2 * B:3 * B], red[3 * B:4 * B]

    # --- softmax over the 2 key positions (query position 0 is causally masked to
    #     [1, 0]); stable single-exp form, reciprocal on the EUP.
    d = s10 - s11
    e = jnp.exp(-jnp.abs(d))
    r = pl.reciprocal(1.0 + e, approx=True)
    er = e * r
    w10 = jnp.where(d >= 0, r, er)
    w11 = jnp.where(d >= 0, er, r)

    y1 = w10 * vs0 + w11 * vs1
    y = jnp.concatenate([vs0, y1], axis=0)                               # (2B, 40)

    # --- sum the 4 Head modules (head h = module*F2 + inner); 0/1 matrix built
    #     without vector div/mod: h % F2 == i  <=>  h - i in {0, 10, 20, 30}.
    a_io = jax.lax.broadcasted_iota(jnp.int32, (NH, F2), 0)
    b_io = jax.lax.broadcasted_iota(jnp.int32, (NH, F2), 1)
    diff = a_io - b_io
    cond = diff == 0
    for m in range(1, N_MODULES):
        cond = cond | (diff == m * F2)
    csel = jnp.where(cond, 1.0, 0.0).astype(bf16)                        # (40, 10)

    o_ref[...] = jnp.dot(y.astype(bf16), csel, preferred_element_type=f32)   # (2B, 10)


@jax.jit
def multi_head_attention(x, wk, wq, wv):
    """x: (B, 2B, 2).  wk/wq/wv: (4, 10, 4, 4) torch nn.Linear weights."""
    B, H, T = x.shape
    assert H == 2 * B and T == F1, "module's .view calls require H == 2*B and T == 2"
    assert B % 2 == 0 and B >= 2, "need an even batch so the (2, 2B) view splits cleanly"
    half = B // 2
    N = B * B
    bf16 = jnp.bfloat16

    # Row-reordered flat input: row p*(N/2) + b*half + j == x[b].reshape(B, 4)[p*half + j].
    # Position-0 rows fill the first N/2 sublanes, position-1 rows the last N/2, so the
    # kernel selects them with free static sublane slices (no selection matmuls/DMAs).
    zf = jnp.transpose(x.reshape(B, 2, half, FEAT), (1, 0, 2, 3)).reshape(N, FEAT)
    zf = zf.astype(bf16)

    # Pack all 40 heads' K/Q/V weights lane-dense (out = in @ W.T -> column h*4 + g) and
    # concatenate K|Q|V into ONE operand, padding each block to a 256-lane stride so the
    # in-kernel lane slices start on 128-lane (vreg) boundaries.
    def pack(w):
        w = w.reshape(NH, FEAT, FEAT)                                   # [h, g, c]
        return jnp.transpose(w, (2, 0, 1)).reshape(FEAT, KQV_W)         # [c, h*4+g]

    pad = jnp.zeros((FEAT, WSTRIDE - KQV_W), jnp.float32)
    wall = jnp.concatenate([pack(wk), pad, pack(wq), pad, pack(wv)], axis=1).astype(bf16)

    vmem = pltpu.MemorySpace.VMEM
    out2 = pl.pallas_call(
        _mha_kernel,
        out_shape=jax.ShapeDtypeStruct((2 * B, F2), jnp.float32),
        in_specs=[pl.BlockSpec(memory_space=vmem), pl.BlockSpec(memory_space=vmem)],
        out_specs=pl.BlockSpec(memory_space=vmem),
    )(zf, wall)

    # rows [0:B] = query position 0, rows [B:2B] = position 1  ->  (B, 2, F2)
    return jnp.swapaxes(out2.reshape(2, B, F2), 0, 1)


def reference(x, wk, wq, wv):
    """Pure-JAX f32/HIGHEST mirror of the PyTorch module (for verification)."""
    B, H, T = x.shape
    tril = jnp.tril(jnp.ones((F1, F1), jnp.float32))
    out = jnp.zeros((B, F1, F2), jnp.float32)
    for m in range(N_MODULES):
        ys = []
        for b in range(B):
            idy = x[b].reshape(B, -1)                                    # (B, 4)
            k = jnp.einsum('rc,igc->irg', idy, wk[m], precision=_HI).reshape(F2, F1, H)
            q = jnp.einsum('rc,igc->irg', idy, wq[m], precision=_HI).reshape(F2, F1, H)
            v = jnp.einsum('rc,igc->irg', idy, wv[m], precision=_HI).reshape(F2, F1, H)
            s = jnp.einsum('iqh,ikh->iqk', q, k, precision=_HI)          # (F2, 2, 2)
            s = jnp.where(tril[None, :T, :T] == 0, -jnp.inf, s)
            w = jax.nn.softmax(s, axis=-1)
            y = jnp.sum(jnp.einsum('iqk,ikh->iqh', w, v, precision=_HI), axis=-1)
            ys.append(y.T)                                               # (2, F2)
        out = out + jnp.stack(ys)                                        # (B, 2, F2)
    return out


if __name__ == "__main__":
    B = 4                                          # batch; module forces H = 2B = 8, T = 2
    k_x, k_wk, k_wq, k_wv = jax.random.split(jax.random.PRNGKey(0), 4)
    x = jax.random.normal(k_x, (B, 2 * B, F1), dtype=jnp.float32)        # (4, 8, 2)

    bound = 1.0 / (FEAT ** 0.5)                    # torch nn.Linear default U(-1/sqrt(fan_in), .)
    wshape = (N_MODULES, F2, FEAT, FEAT)
    wk = jax.random.uniform(k_wk, wshape, jnp.float32, -bound, bound)
    wq = jax.random.uniform(k_wq, wshape, jnp.float32, -bound, bound)
    wv = jax.random.uniform(k_wv, wshape, jnp.float32, -bound, bound)

    out = jax.block_until_ready(multi_head_attention(x, wk, wq, wv))
    ref = jax.block_until_ready(reference(x, wk, wq, wv))

    assert out.shape == (B, F1, F2), out.shape
    # bf16 single-pass MXU operands (per perf guidance): tolerance sized for bf16
    # rounding of the 8-element score/value contractions summed over 4 Head modules.
    assert jnp.allclose(out, ref, atol=5e-2, rtol=1e-2), (out, ref)
    print("KERNEL_OK")
</pallas_src>

<mosaic_0001>
module attributes {stable_mosaic.version = 11 : i64} {
  func.func @_mha_kernel(%arg0: memref<16x4xbf16, #tpu.memory_space<vmem>>, %arg1: memref<4x672xbf16, #tpu.memory_space<vmem>>, %arg2: memref<8x10xf32, #tpu.memory_space<vmem>>) attributes {dimension_semantics = [], scalar_prefetch = 0 : i64, scratch_operands = 0 : i64, tpu.core_type = #tpu.core_type<tc>} {
    %c0 = arith.constant 0 : index
    %c0_0 = arith.constant 0 : index
    %0 = vector.load %arg0[%c0, %c0_0] : memref<16x4xbf16, #tpu.memory_space<vmem>>, vector<16x4xbf16>
    %c0_1 = arith.constant 0 : index
    %c0_2 = arith.constant 0 : index
    %1 = vector.load %arg1[%c0_1, %c0_2] : memref<4x672xbf16, #tpu.memory_space<vmem>>, vector<4x672xbf16>
    %cst = arith.constant dense<0.000000e+00> : vector<16x672xf32>
    %2 = tpu.matmul %0, %1, %cst {dimension_numbers = #tpu.dot_dimension_numbers<[1], [0], [0], [1], [0, 0, 1, 1], [], []>} : vector<16x4xbf16>, vector<4x672xbf16>, vector<16x672xf32> -> vector<16x672xf32>
    %3 = vector.extract_strided_slice %2 {offsets = [0, 0], sizes = [16, 160], strides = [1, 1]} : vector<16x672xf32> to vector<16x160xf32>
    %4 = vector.extract_strided_slice %2 {offsets = [8, 256], sizes = [8, 160], strides = [1, 1]} : vector<16x672xf32> to vector<8x160xf32>
    %5 = vector.extract_strided_slice %2 {offsets = [0, 512], sizes = [16, 160], strides = [1, 1]} : vector<16x672xf32> to vector<16x160xf32>
    %6 = tpu.concatenate %4, %4 in 0 : vector<8x160xf32>, vector<8x160xf32> -> vector<16x160xf32>
    %7 = arith.mulf %3, %6 : vector<16x160xf32>
    %8 = tpu.concatenate %7, %5 in 0 : vector<16x160xf32>, vector<16x160xf32> -> vector<32x160xf32>
    %9 = arith.truncf %8 : vector<32x160xf32> to vector<32x160xbf16>
    %10 = tpu.iota {dimensions = array<i32: 0>} : vector<160x40xi32>
    %11 = tpu.iota {dimensions = array<i32: 1>} : vector<160x40xi32>
    %c4_i32 = arith.constant 4 : i32
    %12 = vector.broadcast %c4_i32 : i32 to vector<160x40xi32>
    %13 = arith.muli %11, %12 : vector<160x40xi32>
    %14 = arith.cmpi sge, %10, %13 : vector<160x40xi32>
    %c4_i32_3 = arith.constant 4 : i32
    %15 = vector.broadcast %c4_i32_3 : i32 to vector<160x40xi32>
    %16 = arith.addi %13, %15 : vector<160x40xi32>
    %17 = arith.cmpi slt, %10, %16 : vector<160x40xi32>
    %18 = arith.andi %14, %17 : vector<160x40xi1>
    %cst_4 = arith.constant 1.000000e+00 : f32
    %cst_5 = arith.constant 0.000000e+00 : f32
    %19 = vector.broadcast %cst_4 : f32 to vector<160x40xf32>
    %20 = vector.broadcast %cst_5 : f32 to vector<160x40xf32>
    %21 = arith.select %18, %19, %20 : vector<160x40xi1>, vector<160x40xf32>
    %22 = arith.truncf %21 : vector<160x40xf32> to vector<160x40xbf16>
    %23 = tpu.iota {dimensions = array<i32: 0>} : vector<16x32xi32>
    %24 = tpu.iota {dimensions = array<i32: 1>} : vector<16x32xi32>
    %c2_i32 = arith.constant 2 : i32
    %25 = vector.broadcast %c2_i32 : i32 to vector<16x32xi32>
    %26 = arith.muli %23, %25 : vector<16x32xi32>
    %27 = arith.cmpi sge, %24, %26 : vector<16x32xi32>
    %c2_i32_6 = arith.constant 2 : i32
    %28 = vector.broadcast %c2_i32_6 : i32 to vector<16x32xi32>
    %29 = arith.addi %26, %28 : vector<16x32xi32>
    %30 = arith.cmpi slt, %24, %29 : vector<16x32xi32>
    %31 = arith.andi %27, %30 : vector<16x32xi1>
    %cst_7 = arith.constant 1.000000e+00 : f32
    %cst_8 = arith.constant 0.000000e+00 : f32
    %32 = vector.broadcast %cst_7 : f32 to vector<16x32xf32>
    %33 = vector.broadcast %cst_8 : f32 to vector<16x32xf32>
    %34 = arith.select %31, %32, %33 : vector<16x32xi1>, vector<16x32xf32>
    %35 = arith.truncf %34 : vector<16x32xf32> to vector<16x32xbf16>
    %cst_9 = arith.constant dense<0.000000e+00> : vector<32x40xf32>
    %36 = tpu.matmul %9, %22, %cst_9 {dimension_numbers = #tpu.dot_dimension_numbers<[1], [0], [0], [1], [0, 0, 1, 1], [], []>} : vector<32x160xbf16>, vector<160x40xbf16>, vector<32x40xf32> -> vector<32x40xf32>
    %37 = arith.truncf %36 : vector<32x40xf32> to vector<32x40xbf16>
    %cst_10 = arith.constant dense<0.000000e+00> : vector<16x40xf32>
    %38 = tpu.matmul %35, %37, %cst_10 {dimension_numbers = #tpu.dot_dimension_numbers<[1], [0], [0], [1], [0, 0, 1, 1], [], []>} : vector<16x32xbf16>, vector<32x40xbf16>, vector<16x40xf32> -> vector<16x40xf32>
    %39 = vector.extract_strided_slice %38 {offsets = [0, 0], sizes = [4, 40], strides = [1, 1]} : vector<16x40xf32> to vector<4x40xf32>
    %40 = vector.extract_strided_slice %38 {offsets = [4, 0], sizes = [4, 40], strides = [1, 1]} : vector<16x40xf32> to vector<4x40xf32>
    %41 = vector.extract_strided_slice %38 {offsets = [8, 0], sizes = [4, 40], strides = [1, 1]} : vector<16x40xf32> to vector<4x40xf32>
    %42 = vector.extract_strided_slice %38 {offsets = [12, 0], sizes = [4, 40], strides = [1, 1]} : vector<16x40xf32> to vector<4x40xf32>
    %43 = arith.subf %39, %40 : vector<4x40xf32>
    %44 = math.absf %43 : vector<4x40xf32>
    %cst_11 = arith.constant 0.000000e+00 : f32
    %45 = vector.broadcast %cst_11 : f32 to vector<4x40xf32>
    %46 = arith.subf %45, %44 : vector<4x40xf32>
    %47 = math.exp %46 : vector<4x40xf32>
    %cst_12 = arith.constant 1.000000e+00 : f32
    %48 = vector.broadcast %cst_12 : f32 to vector<4x40xf32>
    %49 = arith.addf %48, %47 : vector<4x40xf32>
    %50 = tpu.reciprocal %49 {approx = true} : vector<4x40xf32> -> vector<4x40xf32>
    %51 = arith.mulf %47, %50 : vector<4x40xf32>
    %cst_13 = arith.constant 0.000000e+00 : f32
    %52 = vector.broadcast %cst_13 : f32 to vector<4x40xf32>
    %53 = arith.cmpf oge, %43, %52 : vector<4x40xf32>
    %54 = arith.select %53, %50, %51 : vector<4x40xi1>, vector<4x40xf32>
    %cst_14 = arith.constant 0.000000e+00 : f32
    %55 = vector.broadcast %cst_14 : f32 to vector<4x40xf32>
    %56 = arith.cmpf oge, %43, %55 : vector<4x40xf32>
    %57 = arith.select %56, %51, %50 : vector<4x40xi1>, vector<4x40xf32>
    %58 = arith.mulf %54, %41 : vector<4x40xf32>
    %59 = arith.mulf %57, %42 : vector<4x40xf32>
    %60 = arith.addf %58, %59 : vector<4x40xf32>
    %61 = tpu.concatenate %41, %60 in 0 : vector<4x40xf32>, vector<4x40xf32> -> vector<8x40xf32>
    %62 = tpu.iota {dimensions = array<i32: 0>} : vector<40x10xi32>
    %63 = tpu.iota {dimensions = array<i32: 1>} : vector<40x10xi32>
    %64 = arith.subi %62, %63 : vector<40x10xi32>
    %c0_i32 = arith.constant 0 : i32
    %65 = vector.broadcast %c0_i32 : i32 to vector<40x10xi32>
    %66 = arith.cmpi eq, %64, %65 : vector<40x10xi32>
    %c10_i32 = arith.constant 10 : i32
    %67 = vector.broadcast %c10_i32 : i32 to vector<40x10xi32>
    %68 = arith.cmpi eq, %64, %67 : vector<40x10xi32>
    %69 = arith.ori %66, %68 : vector<40x10xi1>
    %c20_i32 = arith.constant 20 : i32
    %70 = vector.broadcast %c20_i32 : i32 to vector<40x10xi32>
    %71 = arith.cmpi eq, %64, %70 : vector<40x10xi32>
    %72 = arith.ori %69, %71 : vector<40x10xi1>
    %c30_i32 = arith.constant 30 : i32
    %73 = vector.broadcast %c30_i32 : i32 to vector<40x10xi32>
    %74 = arith.cmpi eq, %64, %73 : vector<40x10xi32>
    %75 = arith.ori %72, %74 : vector<40x10xi1>
    %cst_15 = arith.constant 1.000000e+00 : f32
    %cst_16 = arith.constant 0.000000e+00 : f32
    %76 = vector.broadcast %cst_15 : f32 to vector<40x10xf32>
    %77 = vector.broadcast %cst_16 : f32 to vector<40x10xf32>
    %78 = arith.select %75, %76, %77 : vector<40x10xi1>, vector<40x10xf32>
    %79 = arith.truncf %78 : vector<40x10xf32> to vector<40x10xbf16>
    %80 = arith.truncf %61 : vector<8x40xf32> to vector<8x40xbf16>
    %cst_17 = arith.constant dense<0.000000e+00> : vector<8x10xf32>
    %81 = tpu.matmul %80, %79, %cst_17 {dimension_numbers = #tpu.dot_dimension_numbers<[1], [0], [0], [1], [0, 0, 1, 1], [], []>} : vector<8x40xbf16>, vector<40x10xbf16>, vector<8x10xf32> -> vector<8x10xf32>
    %c0_18 = arith.constant 0 : index
    %c0_19 = arith.constant 0 : index
    %82 = vector.load %arg2[%c0_18, %c0_19] : memref<8x10xf32, #tpu.memory_space<vmem>>, vector<8x10xf32>
    tpu.vector_store %arg2[%c0_18, %c0_19], %81 {strides = array<i32>} : memref<8x10xf32, #tpu.memory_space<vmem>>, vector<8x10xf32>,
    return
  }
}

</mosaic_0001>

<bundles_post_ra>
// kernel: multi_head_attention.1
= control target key start
LH: loop header
LB: loop body
LE: loop exit
PB: predicated region body
PF: predicated region fallthrough
CT: control target
= control target key end

     0   :  { %v139_v0 = vlaneseq  ;;  %vm36_vm1 = vcmask 1041408   ;;  %vm32_vm11 = vcmask 31744   ;;  %v476_v28 = vmov 1.0|1.0   ;;  %s667_s1 = inlined_call_operand.vmem [shape: bf16[4,672], index: 1, kind: input, shape index: {}]   ;;  %s668_s0 = inlined_call_operand.vmem [shape: bf16[16,4], index: 0, kind: input, shape index: {}]   ;;  %s669_s2 = inlined_call_operand.vmem [shape: f32[8,10], index: 2, kind: output, shape index: {}]  }
   0x1   :  { %v14_v1 = vld [vmem:[%s667_s1] sm:$0xff]  ;;  %v15_v2 = vld [vmem:[%s667_s1 + $0x8] sm:$0xf] }
   0x2   :  { %22 = vst [vmem:[#allocation1] ss:$4 sm:$0xff] %v14_v1  ;;  %v499_v3 = vshrl.u32 %v139_v0, 7  ;;  %v501_v4 = vand.u32 127, %v139_v0  ;;  %v469_v19 = vld [vmem:[%s668_s0] sm:$0xff] }
   0x3   :  { %25 = vst [vmem:[#allocation1 + $0x20] ss:$4 sm:$0xff] %v15_v2 }
   0x4   :  { %v154_v5 = vadd.s32 112, %v499_v3  ;;  %v155_v6 = vadd.s32 120, %v499_v3  ;;  %v506_v7 = vmul.u32 4, %v501_v4  ;;  %v152_v8 = vadd.s32 96, %v499_v3 }
   0x5   :  { %v153_v10 = vadd.s32 104, %v499_v3  ;;  %v150_v11 = vadd.s32 80, %v499_v3  ;;  %v151_v12 = vadd.s32 88, %v499_v3  ;;  %v148_v30 = vadd.s32 64, %v499_v3 }
   0x6   :  { %vm177_vm0 = vcmp.ge.s32.totalorder %v154_v5, %v506_v7  ;;  %v511_v9 = vadd.s32 4, %v506_v7  ;;  %vm178_vm2 = vcmp.ge.s32.totalorder %v155_v6, %v506_v7  ;;  %vm175_vm6 = vcmp.ge.s32.totalorder %v152_v8, %v506_v7 }
   0x7   :  { %vm176_vm9 = vcmp.ge.s32.totalorder %v153_v10, %v506_v7  ;;  %vm173_vm14 = vcmp.ge.s32.totalorder %v150_v11, %v506_v7  ;;  %v149_v31 = vadd.s32 72, %v499_v3  ;;  %v146_v32 = vadd.s32 48, %v499_v3 }
   0x8   :  { %vm198_vm3 = vcmp.lt.s32.totalorder %v154_v5, %v511_v9  ;;  %vm199_vm4 = vcmp.lt.s32.totalorder %v155_v6, %v511_v9  ;;  %vm196_vm7 = vcmp.lt.s32.totalorder %v152_v8, %v511_v9  ;;  %vm197_vm10 = vcmp.lt.s32.totalorder %v153_v10, %v511_v9 }
   0x9   :  { %v26_v13 = vld.sshfl [vmem:[#allocation1] sm:$0xff pattern:$0x73625140]  ;;  %v27_v14 = vld.sshfl [vmem:[#allocation1 + $0x8] sm:$0xff pattern:$0x73625140]  ;;  %vm519_vm5 = vmand %vm177_vm0, %vm198_vm3  ;;  %vm194_vm15 = vcmp.lt.s32.totalorder %v150_v11, %v511_v9  ;;  %vm195_vm3 = vcmp.lt.s32.totalorder %v151_v12, %v511_v9 }
   0xa   :  { %v37_v16 = vsel %vm36_vm1, %v26_v13, 0  ;;  %v39_v17 = vsel %vm36_vm1, %v27_v14, 0  ;;  %v28_v18 = vld.sshfl [vmem:[#allocation1 + $0x10] sm:$0xff pattern:$0x73625140]  ;;  %vm530_vm8 = vmand %vm178_vm2, %vm199_vm4  ;;  %vm174_vm2 = vcmp.ge.s32.totalorder %v151_v12, %v506_v7  ;;  %v147_v33 = vadd.s32 56, %v499_v3 }
   0xb   :  { %56 = vmatpush.bf16.msra.mxu0 %v37_v16  ;;  %70 = vmatpush.bf16.msra.mxu1 %v39_v17  ;;  %v41_v21 = vsel %vm36_vm1, %v28_v18, 0  ;;  %v29_v22 = vld.sshfl [vmem:[#allocation1 + $0x18] sm:$0xff pattern:$0x73625140]  ;;  %vm441_vm12 = vmpackc.low %vm530_vm8, %vm519_vm5  ;;  %vm172_vm8 = vcmp.ge.s32.totalorder %v149_v31, %v506_v7  ;;  %v589_v34 = vadd.s32 32, %v499_v3  ;;  %v145_v35 = vadd.s32 40, %v499_v3 }
   0xc   :  { %84 = vmatpush.bf16.msra.mxu2 %v41_v21  ;;  %v43_v23 = vsel %vm36_vm1, %v29_v22, 0  ;;  %v30_v24 = vld.sshfl [vmem:[#allocation1 + $0x20] sm:$0xff pattern:$0x73625140]  ;;  %vm546_vm13 = vmand %vm175_vm6, %vm196_vm7  ;;  %v600_v36 = vadd.s32 16, %v499_v3  ;;  %v603_v37 = vadd.s32 24, %v499_v3 }
   0xd   :  { %97 = vmatpush.bf16.msra.mxu3 %v43_v23  ;;  %v45_v26 = vsel %vm36_vm1, %v30_v24, 0  ;;  %v31_v27 = vld.sshfl [vmem:[#allocation1 + $0x28] sm:$0xff pattern:$0x73625140]  ;;  %vm217_vm0 = vmand %vm176_vm9, %vm197_vm10  ;;  %vm192_vm9 = vcmp.lt.s32.totalorder %v148_v30, %v511_v9  ;;  %vm193_vm10 = vcmp.lt.s32.totalorder %v149_v31, %v511_v9  ;;  %v158_v38 = vadd.s32 144, %v499_v3 }
   0xe   :  { %435 = vmatmul.msk.bf16.vlgmr.msra.gmra.mxu0 %vm32_vm11, %v469_v19  ;;  %436 = vmatmul.msk.bf16.vlgmr.msra.gmra.mxu1 %vm32_vm11, %v469_v19  ;;  %v47_v29 = vsel %vm36_vm1, %v31_v27, 0  ;;  %vm443_vm4 = vmpackc.low %vm217_vm0, %vm546_vm13  ;;  %vm171_vm1 = vcmp.ge.s32.totalorder %v148_v30, %v506_v7  ;;  %vm190_vm0 = vcmp.lt.s32.totalorder %v146_v32, %v511_v9  ;;  %v159_v39 = vadd.s32 152, %v499_v3 }
   0xf   :  { %437 = vmatmul.msk.bf16.vlgmr.msra.gmra.mxu2 %vm32_vm11, %v469_v19  ;;  %110 = vmatpush.bf16.msrb.mxu0 %v45_v26  ;;  %vm214_vm5 = vmand %vm173_vm14, %vm194_vm15  ;;  %vm170_vm15 = vcmp.ge.s32.totalorder %v147_v33, %v506_v7  ;;  %v621_v40 = vadd.s32 8, %v499_v3  ;;  %v156_v41 = vadd.s32 128, %v499_v3  ;;  %v157_v42 = vadd.s32 136, %v499_v3 }
  0x10   :  { %442 = vmatpush.bf16.msk.msrb.mxu2 %vm441_vm12, %v476_v28  ;;  %438 = vmatmul.msk.bf16.vlgmr.msra.gmra.mxu3 %vm32_vm11, %v469_v19  ;;  %vm215_vm6 = vmand %vm174_vm2, %vm195_vm3  ;;  %vm191_vm2 = vcmp.lt.s32.totalorder %v147_v33, %v511_v9  ;;  %v254_v5 = vmul.u32 2, %v499_v3  ;;  %v477_v18 = vmov 0.0   ;;  %v360_v23 = vsub.s32 %v589_v34, %v501_v4 }
  0x11   :  { %124 = vmatpush.bf16.msrb.mxu1 %v47_v29  ;;  %vm445_vm7 = vmpackc.low %vm215_vm6, %vm214_vm5  ;;  %vm167_vm6 = vcmp.ge.s32.totalorder %v589_v34, %v506_v7  ;;  %v359_v24 = vsub.s32 %v603_v37, %v501_v4  ;;  %v358_v27 = vsub.s32 %v600_v36, %v501_v4  ;;  %v357_v30 = vsub.s32 %v621_v40, %v501_v4 }
  0x12   :  { %vm212_vm12 = vmand %vm171_vm1, %vm192_vm9  ;;  %vm188_vm1 = vcmp.lt.s32.totalorder %v589_v34, %v511_v9 }
  0x13   :  { %vm213_vm13 = vmand %vm172_vm8, %vm193_vm10  ;;  %vm189_vm8 = vcmp.lt.s32.totalorder %v145_v35, %v511_v9 }
  0x14   :  { %444 = vmatpush.bf16.msk.msrb.mxu2 %vm443_vm4, %v476_v28  ;;  %vm447_vm14 = vmpackc.low %vm213_vm13, %vm212_vm12  ;;  %vm165_vm13 = vcmp.ge.s32.totalorder %v600_v36, %v506_v7 }
  0x15   :  { %vm211_vm4 = vmand %vm170_vm15, %vm191_vm2  ;;  %vm187_vm15 = vcmp.lt.s32.totalorder %v603_v37, %v511_v9  ;;  %vm181_vm2 = vcmp.ge.s32.totalorder %v158_v38, %v506_v7 }
  0x16   :  { %vm208_vm9 = vmand %vm167_vm6, %vm188_vm1  ;;  %vm203_vm6 = vcmp.lt.s32.totalorder %v159_v39, %v511_v9 }
  0x18   :  { %446 = vmatpush.bf16.msk.msrb.mxu2 %vm445_vm7, %v476_v28  ;;  %vm168_vm7 = vcmp.ge.s32.totalorder %v145_v35, %v506_v7 }
  0x19   :  { %vm209_vm10 = vmand %vm168_vm7, %vm189_vm8  ;;  %vm163_vm8 = vcmp.ge.s32.totalorder %v499_v3, %v506_v7 }
  0x1a   :  { %vm451_vm12 = vmpackc.low %vm209_vm10, %vm208_vm9  ;;  %vm184_vm9 = vcmp.lt.s32.totalorder %v499_v3, %v511_v9 }
  0x1c   :  { %448 = vmatpush.bf16.msk.msrb.mxu2 %vm447_vm14, %v476_v28  ;;  %vm166_vm14 = vcmp.ge.s32.totalorder %v603_v37, %v506_v7 }
  0x1e   :  { %439 = vmatmul.msk.bf16.vlgmr.msrb.gmra.mxu0 %vm32_vm11, %v469_v19  ;;  %440 = vmatmul.msk.bf16.vlgmr.msrb.gmra.mxu1 %vm32_vm11, %v469_v19  ;;  %vm169_vm11 = vcmp.ge.s32.totalorder %v146_v32, %v506_v7  ;;  %v356_v32 = vsub.s32 %v499_v3, %v501_v4 }
  0x1f   :  { %vm210_vm3 = vmand %vm169_vm11, %vm190_vm0  ;;  %vm186_vm11 = vcmp.lt.s32.totalorder %v600_v36, %v511_v9 }
  0x20   :  { %vm449_vm5 = vmpackc.low %vm211_vm4, %vm210_vm3  ;;  %vm202_vm3 = vcmp.lt.s32.totalorder %v158_v38, %v511_v9 }
  0x21   :  { %450 = vmatpush.bf16.msk.msrb.mxu2 %vm449_vm5, %v476_v28  ;;  %vm206_vm0 = vmand %vm165_vm13, %vm186_vm11  ;;  %vm182_vm5 = vcmp.ge.s32.totalorder %v159_v39, %v506_v7  ;;  %vm185_vm13 = vcmp.lt.s32.totalorder %v621_v40, %v511_v9 }
  0x22   :  { %vm207_vm4 = vmand %vm166_vm14, %vm187_vm15  ;;  %vm179_vm15 = vcmp.ge.s32.totalorder %v156_v41, %v506_v7 }
  0x23   :  { %vm453_vm7 = vmpackc.low %vm207_vm4, %vm206_vm0  ;;  %vm200_vm0 = vcmp.lt.s32.totalorder %v156_v41, %v511_v9  ;;  %vm201_vm4 = vcmp.lt.s32.totalorder %v157_v42, %v511_v9  ;;  %v258_v9 = vadd.s32 2, %v254_v5 }
  0x24   :  { %vm222_vm1 = vmand %vm181_vm2, %vm202_vm3  ;;  %vm180_vm3 = vcmp.ge.s32.totalorder %v157_v42, %v506_v7 }
  0x25   :  { %452 = vmatpush.bf16.msk.msrb.mxu2 %vm451_vm12, %v476_v28  ;;  %vm223_vm10 = vmand %vm182_vm5, %vm203_vm6  ;;  %vm164_vm12 = vcmp.ge.s32.totalorder %v621_v40, %v506_v7  ;;  %v255_v7 = vmul.u32 2, %v621_v40 }
  0x26   :  { %vm457_vm14 = vmpackc.low %vm223_vm10, %vm222_vm1  ;;  %vm260_vm10 = vcmp.lt.s32.totalorder %v501_v4, %v258_v9 }
  0x27   :  { %458 = vmatpush.bf16.msk.msrb.mxu3 %vm457_vm14, %v476_v28  ;;  %vm204_vm11 = vmand %vm163_vm8, %vm184_vm9  ;;  %vm267_vm8 = vcmask 261120   ;;  %v259_v10 = vadd.s32 2, %v255_v7  ;;  %vm256_vm9 = vcmp.ge.s32.totalorder %v501_v4, %v254_v5 }
  0x28   :  { %vm205_vm2 = vmand %vm164_vm12, %vm185_vm13  ;;  %vm257_vm12 = vcmp.ge.s32.totalorder %v501_v4, %v255_v7 }
  0x29   :  { %454 = vmatpush.bf16.msk.msrb.mxu2 %vm453_vm7, %v476_v28  ;;  %vm455_vm5 = vmpackc.low %vm205_vm2, %vm204_vm11  ;;  %vm261_vm13 = vcmp.lt.s32.totalorder %v501_v4, %v259_v10 }
  0x2a   :  { %vm220_vm6 = vmand %vm179_vm15, %vm200_vm0  ;;  %vm365_vm15 = vcmp.eq.s32.totalorder %v360_v23, 0  ;;  %vm370_vm0 = vcmp.eq.s32.totalorder %v360_v23, 10 }
  0x2b   :  { %vm221_vm7 = vmand %vm180_vm3, %vm201_vm4  ;;  %vm380_vm3 = vcmp.eq.s32.totalorder %v360_v23, 20 }
  0x2c   :  { %vm459_vm1 = vmpackc.low %vm221_vm7, %vm220_vm6  ;;  %vm354_vm7 = vcmask 1043456  }
  0x2d   :  { %456 = vmatpush.bf16.msk.msrb.mxu2 %vm455_vm5, %v476_v28  ;;  %460 = vmatpush.bf16.msk.msrb.mxu3 %vm459_vm1, %v476_v28  ;;  %vm262_vm14 = vmand %vm256_vm9, %vm260_vm10  ;;  %vm390_vm5 = vcmp.eq.s32.totalorder %v360_v23, 30  ;;  %vm364_vm1 = vcmp.eq.s32.totalorder %v359_v24, 0  ;;  %vm363_vm9 = vcmp.eq.s32.totalorder %v358_v27, 0  ;;  %vm368_vm10 = vcmp.eq.s32.totalorder %v358_v27, 10 }
  0x2e   :  { %vm263_vm11 = vmand %vm257_vm12, %vm261_vm13  ;;  %v264_v19 = vsel %vm262_vm14, 1.0, %v477_v18  ;;  %vm379_vm13 = vcmp.eq.s32.totalorder %v359_v24, 20 }
  0x2f   :  { %v265_v20 = vsel %vm263_vm11, 1.0, %v477_v18  ;;  %vm375_vm2 = vmor %vm365_vm15, %vm370_vm0  ;;  %vm378_vm11 = vcmp.eq.s32.totalorder %v358_v27, 20  ;;  %vm389_vm15 = vcmp.eq.s32.totalorder %v359_v24, 30 }
  0x30   :  { %v266_v22 = vpack.c.bf16 %v265_v20, %v264_v19  ;;  %vm385_vm4 = vmor %vm375_vm2, %vm380_vm3 }
  0x31   :  { %vm395_vm6 = vmor %vm385_vm4, %vm390_vm5  ;;  %vm362_vm5 = vcmp.eq.s32.totalorder %v357_v30, 0 }
  0x32   :  { %v400_v25 = vsel %vm395_vm6, 1.0, %v477_v18  ;;  %vm373_vm14 = vmor %vm363_vm9, %vm368_vm10  ;;  %vm367_vm6 = vcmp.eq.s32.totalorder %v357_v30, 10 }
  0x33   :  { %v403_v26 = vpack.c.bf16 %v400_v25, %v400_v25  ;;  %vm383_vm0 = vmor %vm373_vm14, %vm378_vm11 }
  0x35   :  { %v410_v29 = vsel %vm354_vm7, %v403_v26, 0 }
  0x36   :  { %417 = vmatpush.bf16.msra.mxu1 %v410_v29 }
  0x8b   :  { %v58_v43 = vpop.f32.mrf.mxu0  ;;  %v72_v44 = vpop.f32.mrf.mxu1 }
  0x92   :  { %v86_v45 = vpop.f32.mrf.mxu2 }
  0x93   :  { %v99_v46 = vpop.f32.mrf.mxu3  ;;  %v60_v47 = vpop.f32.mrf.mxu0 }
  0x94   :  { %v74_v48 = vpop.f32.mrf.mxu1 }
  0x9a   :  { %v87_v49 = vpop.f32.mrf.mxu2 }
  0x9b   :  { %v131_v50 = vmul.f32 %v87_v49, %v58_v43  ;;  %v133_v51 = vmul.f32 %v87_v49, %v60_v47  ;;  %v100_v52 = vpop.f32.mrf.mxu3  ;;  %v112_v57 = vpop.f32.mrf.mxu0 }
  0x9c   :  { %v132_v53 = vmul.f32 %v100_v52, %v72_v44  ;;  %v134_v54 = vmul.f32 %v100_v52, %v74_v48  ;;  %v126_v58 = vpop.f32.mrf.mxu1 }
  0x9d   :  { %v135_v55 = vpack.c.bf16 %v133_v51, %v131_v50 }
  0x9e   :  { %v136_v56 = vpack.c.bf16 %v134_v54, %v132_v53 }
  0x9f   :  { %282 = vmatmul.bf16.vlgmr.msrb.gmra.mxu2 %v135_v55 }
  0xa0   :  { %461 = vmatmul.msk.bf16.vlgmr.msrb.gmra.mxu3 %vm267_vm8, %v136_v56 }
  0xa3   :  { %v114_v59 = vpop.f32.mrf.mxu0 }
  0xa4   :  { %v128_v60 = vpop.f32.mrf.mxu1  ;;  %v137_v61 = vpack.c.bf16 %v114_v59, %v112_v57 }
  0xa5   :  { %v138_v62 = vpack.c.bf16 %v128_v60, %v126_v58 }
  0xaf   :  { %287 = vmatmul.bf16.gmra.mxu2 %v137_v61 }
  0xb0   :  { %462 = vmatmul.msk.bf16.gmra.mxu3 %vm267_vm8, %v138_v62 }
 0x122   :  { %v283_v63 = vpop.f32.mrf.mxu2 }
 0x123   :  { %v302_v0 = vpop.f32.mrf.mxu3 }
 0x124   :  { %v303_v17 = vadd.f32 %v302_v0, %v283_v63 }
 0x12a   :  { %v285_v1 = vpop.f32.mrf.mxu2 }
 0x12b   :  { %v304_v2 = vpop.f32.mrf.mxu3 }
 0x12c   :  { %v305_v15 = vadd.f32 %v304_v2, %v285_v1 }
 0x12e   :  { %v312_v21 = vpack.c.bf16 %v305_v15, %v303_v17 }
 0x132   :  { %v288_v6 = vpop.f32.mrf.mxu2 }
 0x133   :  { %v307_v8 = vpop.f32.mrf.mxu3 }
 0x134   :  { %v308_v13 = vadd.f32 %v307_v8, %v288_v6 }
 0x13a   :  { %v290_v11 = vpop.f32.mrf.mxu2 }
 0x13b   :  { %v309_v12 = vpop.f32.mrf.mxu3 }
 0x13c   :  { %v310_v14 = vadd.f32 %v309_v12, %v290_v11 }
 0x13e   :  { %v313_v16 = vpack.c.bf16 %v310_v14, %v308_v13 }
 0x140   :  { %323 = vmatpush.bf16.msra.mxu0 %v313_v16 }
 0x144   :  { %324 = vmatpush.bf16.msra.mxu0 %v312_v21 }
 0x147   :  { %463 = vmatmul.msk.bf16.vlgmr.msra.gmra.mxu0 %vm267_vm8, %v266_v22  ;;  %vm369_vm8 = vcmp.eq.s32.totalorder %v359_v24, 10 }
 0x148   :  { %vm374_vm12 = vmor %vm364_vm1, %vm369_vm8  ;;  %vm361_vm1 = vcmp.eq.s32.totalorder %v356_v32, 0 }
 0x149   :  { %vm384_vm2 = vmor %vm374_vm12, %vm379_vm13  ;;  %vm405_vm12 = vcmask 326656   ;;  %vm425_vm13 = vcmask 80896  }
 0x14a   :  { %vm394_vm3 = vmor %vm384_vm2, %vm389_vm15 }
 0x14b   :  { %vm464_vm4 = vmpackc.low %vm394_vm3, %vm383_vm0 }
 0x14c   :  { %465 = vmatpush.bf16.msk.msra.mxu1 %vm464_vm4, %v476_v28  ;;  %vm372_vm8 = vmor %vm362_vm5, %vm367_vm6 }
 0x14d   :  { %vm466_vm9 = vmpackc.low %vm372_vm8, %vm361_vm1 }
 0x150   :  { %467 = vmatpush.bf16.msk.msra.mxu1 %vm466_vm9, %v476_v28 }
 0x1c4   :  { %v326_v31 = vpop.f32.mrf.mxu0 }
 0x1c5   :  { %v332_v33 = vrot.slane %v326_v31, 4 }
 0x1c7   :  { %v334_v34 = vsub.f32 %v326_v31, %v332_v33 }
 0x1c9   :  { %v335_v35 = vand.u32 2147483647, %v334_v34  ;;  %vm342_vm10 = vcmp.ge.f32.partialorder %v334_v34, 0.0 }
 0x1cb   :  { %v336_v36 = vsub.f32 0.0, %v335_v35 }
 0x1cc   :  { %v328_v3 = vpop.f32.mrf.mxu0 }
 0x1cd   :  { %v337_v37 = vmul.f32 1.442695, %v336_v36  ;;  %v347_v41 = vrot.slane %v328_v3, 4 }
 0x1cf   :  { %472 = vpow2.f32 %v337_v37 }
 0x1d5   :  { %v473_v38 = vpop.eup %472 }
 0x1d6   :  { %v339_v39 = vadd.f32 1.0, %v473_v38 }
 0x1d8   :  { %474 = vrcp.f32 %v339_v39 }
 0x1de   :  { %v475_v4 = vpop.eup %474 }
 0x1df   :  { %v341_v40 = vmul.f32 %v475_v4, %v473_v38 }
 0x1e1   :  { %v343_v42 = vsel %vm342_vm10, %v475_v4, %v341_v40  ;;  %v344_v43 = vsel %vm342_vm10, %v341_v40, %v475_v4 }
 0x1e2   :  { %v345_v44 = vmul.f32 %v343_v42, %v328_v3  ;;  %v349_v45 = vmul.f32 %v347_v41, %v344_v43 }
 0x1e4   :  { %v350_v46 = vadd.f32 %v349_v45, %v345_v44 }
 0x1e6   :  { %v352_v47 = vrot.slane %v350_v46, 4 }
 0x1e8   :  { %v355_v48 = vsel %vm354_vm7, %v328_v3, %v352_v47 }
 0x1e9   :  { %v404_v28 = vpack.c.bf16 %v355_v48, %v355_v48 }
 0x1eb   :  { %468 = vmatmul.msk.bf16.vlgmr.msra.gmra.mxu1 %vm405_vm12, %v404_v28 }
 0x268   :  { %v421_v49 = vpop.f32.mrf.mxu1 }
 0x269   :  { %426 = vst.msk [vmem:[%s669_s2] sm:$0xff] %vm425_vm13, %v421_v49 }
 0x270   :  { %v423_v50 = vpop.f32.mrf.mxu1 }

</bundles_post_ra>
